<compile_context>
chip_gen: v7x
topology: tpu7x:2x2x1
jax: 0.10.0
libtpu: 0.0.40
codegen_flags: <defaults>
</compile_context>

<pallas_src>
import functools
import math

import jax
import jax.numpy as jnp
from jax.experimental import pallas as pl
from jax.experimental.pallas import tpu as pltpu


# --------------------------------------------------------------------------
# Shared helper: k-tap 1-D channel conv (zero-padded cross-correlation) + sigmoid
# --------------------------------------------------------------------------
def _channel_conv_sigmoid(mean_f32, w_ref, *, k, pad, channels):
    """mean_f32: (C, 1) f32 pooled means.  w_ref: (k,) f32 taps in SMEM.
    PyTorch Conv1d semantics: out[c] = sum_t w[t] * mean[c + t - pad] (zero pad)."""
    ch = jax.lax.broadcasted_iota(jnp.int32, (channels, 1), 0)
    conv = jnp.zeros((channels, 1), jnp.float32)
    for t in range(k):                                   # k is small & static
        shift = t - pad
        rot = (-shift) % channels
        if rot == 0:
            shifted = mean_f32
        else:
            shifted = pltpu.roll(mean_f32, rot, 0)       # out[c] = mean[c+shift] (circular)
        valid = (ch + shift >= 0) & (ch + shift < channels)
        conv = conv + w_ref[t] * jnp.where(valid, shifted, 0.0)
    return jax.nn.sigmoid(conv)                          # (C, 1) f32


# --------------------------------------------------------------------------
# Fused path: pool + conv + sigmoid + scale in ONE kernel (x read once)
# --------------------------------------------------------------------------
def _eca_fused_kernel(w_ref, x_ref, o_ref, *, inv_hw, k, pad, channels):
    # x_ref/o_ref: (1, C, HW) full per-batch slab in VMEM
    x = x_ref[0]                                                       # (C, HW)
    mean = jnp.sum(x.astype(jnp.float32), axis=-1, keepdims=True) * inv_hw
    scale = _channel_conv_sigmoid(mean, w_ref, k=k, pad=pad, channels=channels)
    o_ref[0] = x * scale.astype(x.dtype)                               # lane-dense store


def _eca_fused(x, conv_weight):
    B, C, HW = x.shape
    k = int(conv_weight.shape[0])
    pad = (k - 1) // 2
    return pl.pallas_call(
        functools.partial(_eca_fused_kernel,
                          inv_hw=1.0 / HW, k=k, pad=pad, channels=C),
        out_shape=jax.ShapeDtypeStruct((B, C, HW), x.dtype),
        grid_spec=pltpu.PrefetchScalarGridSpec(
            num_scalar_prefetch=1,                                     # (k,) taps -> SMEM
            grid=(B,),
            in_specs=[pl.BlockSpec((1, C, HW), lambda b, w: (b, 0, 0))],
            out_specs=pl.BlockSpec((1, C, HW), lambda b, w: (b, 0, 0)),
        ),
        compiler_params=pltpu.CompilerParams(dimension_semantics=("parallel",)),
    )(conv_weight.astype(jnp.float32), x)


# --------------------------------------------------------------------------
# Fallback pass 1: global average pool (f32 accumulation) + conv + sigmoid
# --------------------------------------------------------------------------
def _pool_conv_sigmoid_kernel(w_ref, x_ref, s_ref, *, inv_hw, k, pad, channels):
    # x_ref: (1, C, HW_TILE); s_ref: (1, C, 1) f32 output / pool accumulator
    hw_i = pl.program_id(1)

    @pl.when(hw_i == 0)
    def _init():
        s_ref[...] = jnp.zeros_like(s_ref)

    x = x_ref[0]                                                       # (C, HW_TILE)
    s_ref[...] += jnp.sum(x.astype(jnp.float32), axis=-1, keepdims=True)[None]

    @pl.when(hw_i == pl.num_programs(1) - 1)
    def _finalize():
        mean = s_ref[0] * inv_hw                                       # (C, 1) f32
        s_ref[...] = _channel_conv_sigmoid(
            mean, w_ref, k=k, pad=pad, channels=channels)[None]


# --------------------------------------------------------------------------
# Fallback pass 2: out = x * scale  (multiply in input dtype, lane-dense tiles)
# --------------------------------------------------------------------------
def _scale_kernel(x_ref, s_ref, o_ref):
    x = x_ref[0]                                                       # (C_TILE, HW_TILE)
    o_ref[0] = x * s_ref[0].astype(x.dtype)                            # broadcast over lanes


def _largest_aligned_divisor(n: int, unit: int, max_t: int) -> int:
    """Largest divisor of n that is a multiple of `unit` and <= max_t.
    Falls back to n itself (a full-extent block is always legal)."""
    if n <= max_t:
        return n
    t = (max_t // unit) * unit
    while t >= unit:
        if n % t == 0:
            return t
        t -= unit
    return n


def _eca_two_pass(x, conv_weight):
    B, C, HW = x.shape
    k = int(conv_weight.shape[0])
    pad = (k - 1) // 2
    itemsize = x.dtype.itemsize
    target_bytes = 2 << 20                                             # ~2 MB per block

    # ---- pass 1: pooled scale, shape (B, C, 1) f32 ----
    hw_tile_a = _largest_aligned_divisor(HW, 128, max(128, target_bytes // (itemsize * C)))
    scale = pl.pallas_call(
        functools.partial(_pool_conv_sigmoid_kernel,
                          inv_hw=1.0 / HW, k=k, pad=pad, channels=C),
        out_shape=jax.ShapeDtypeStruct((B, C, 1), jnp.float32),
        grid_spec=pltpu.PrefetchScalarGridSpec(
            num_scalar_prefetch=1,
            grid=(B, HW // hw_tile_a),
            in_specs=[pl.BlockSpec((1, C, hw_tile_a), lambda b, h, w: (b, 0, h))],
            out_specs=pl.BlockSpec((1, C, 1), lambda b, h, w: (b, 0, 0)),
        ),
        compiler_params=pltpu.CompilerParams(
            dimension_semantics=("parallel", "arbitrary")),
    )(conv_weight.astype(jnp.float32), x)

    # ---- pass 2: out = x * scale ----
    c_tile = _largest_aligned_divisor(C, 8, 256)
    hw_tile_b = _largest_aligned_divisor(HW, 128, max(128, target_bytes // (itemsize * c_tile)))
    return pl.pallas_call(
        _scale_kernel,
        out_shape=jax.ShapeDtypeStruct((B, C, HW), x.dtype),
        grid=(B, C // c_tile, HW // hw_tile_b),
        in_specs=[
            pl.BlockSpec((1, c_tile, hw_tile_b), lambda b, cj, hj: (b, cj, hj)),
            pl.BlockSpec((1, c_tile, 1), lambda b, cj, hj: (b, cj, 0)),
        ],
        out_specs=pl.BlockSpec((1, c_tile, hw_tile_b), lambda b, cj, hj: (b, cj, hj)),
        compiler_params=pltpu.CompilerParams(
            dimension_semantics=("parallel", "parallel", "parallel")),
    )(x, scale)


# --------------------------------------------------------------------------
# Public wrapper
# --------------------------------------------------------------------------
def eca_block_pallas(x_nchw: jnp.ndarray, conv_weight: jnp.ndarray,
                     *, fuse_bytes_limit: int = 3 << 20) -> jnp.ndarray:
    """x_nchw: (B, C, H, W); conv_weight: (k,) 1-D conv taps (no bias)."""
    B, C, H, W = x_nchw.shape
    HW = H * W
    x = x_nchw.reshape(B, C, HW)
    slab_bytes = C * HW * x.dtype.itemsize
    if slab_bytes <= fuse_bytes_limit:
        out = _eca_fused(x, conv_weight)        # x read once, written once
    else:
        out = _eca_two_pass(x, conv_weight)     # tiled, VMEM-safe fallback
    return out.reshape(B, C, H, W)


def eca_block_reference(x_nchw: jnp.ndarray, conv_weight: jnp.ndarray) -> jnp.ndarray:
    """Pure-JAX reference mirroring the PyTorch forward."""
    B, C, H, W = x_nchw.shape
    k = conv_weight.shape[0]
    pad = (k - 1) // 2
    xf = x_nchw.astype(jnp.float32)
    pooled = jnp.mean(xf, axis=(2, 3))                                 # (B, C)
    padded = jnp.pad(pooled, ((0, 0), (pad, pad)))
    conv = jnp.zeros_like(pooled)
    for t in range(k):
        conv = conv + conv_weight[t] * padded[:, t:t + C]
    scale = jax.nn.sigmoid(conv)[:, :, None, None]                     # (B, C, 1, 1)
    return (xf * scale).astype(x_nchw.dtype)


if __name__ == "__main__":
    # Module config: channel=8 -> kernel = int(abs((log2(8)+1)/2)) = 2 -> odd-ify -> 3
    B, C, H, W = 2, 8, 16, 16
    kernel = int(abs((math.log(C, 2) + 1) / 2))
    kernel = kernel if kernel % 2 else kernel + 1                      # = 3

    key = jax.random.PRNGKey(0)
    kx, kw = jax.random.split(key)
    x = jax.random.normal(kx, (B, C, H, W), dtype=jnp.float32)
    # Deterministic synthetic Conv1d(1,1,k,bias=False) weight, shape (k,)
    conv_weight = (jax.random.uniform(kw, (kernel,), dtype=jnp.float32) - 0.5) * (
        2.0 / math.sqrt(kernel))

    ref = eca_block_reference(x, conv_weight)

    # Fused (default) path
    out_fused = jax.block_until_ready(eca_block_pallas(x, conv_weight))
    assert out_fused.shape == x.shape
    assert jnp.allclose(out_fused, ref, atol=1e-5, rtol=1e-5), float(
        jnp.max(jnp.abs(out_fused - ref)))

    # Two-pass fallback path (forced, to keep it exercised on real hardware)
    out_2p = jax.block_until_ready(eca_block_pallas(x, conv_weight, fuse_bytes_limit=0))
    assert jnp.allclose(out_2p, ref, atol=1e-5, rtol=1e-5), float(
        jnp.max(jnp.abs(out_2p - ref)))

    print("KERNEL_OK")
</pallas_src>

<mosaic_0001>
module attributes {stable_mosaic.version = 11 : i64} {
  func.func @_eca_fused_kernel(%arg0: i32, %arg1: memref<3xf32, #tpu.memory_space<smem>>, %arg2: memref<1x8x256xf32, #tpu.memory_space<vmem>>, %arg3: memref<1x8x256xf32, #tpu.memory_space<vmem>>) attributes {dimension_semantics = [#tpu.dimension_semantics<parallel>], iteration_bounds = array<i64: 2>, scalar_prefetch = 1 : i64, scratch_operands = 0 : i64, tpu.core_type = #tpu.core_type<tc>, window_params = [{transform_indices = @transform_0, window_bounds = array<i64: 1, 8, 256>}, {transform_indices = @transform_1, window_bounds = array<i64: 1, 8, 256>}]} {
    %c0 = arith.constant 0 : index
    %c0_0 = arith.constant 0 : index
    %c0_1 = arith.constant 0 : index
    %0 = vector.load %arg2[%c0, %c0_0, %c0_1] : memref<1x8x256xf32, #tpu.memory_space<vmem>>, vector<1x8x256xf32>
    %1 = vector.shape_cast %0 : vector<1x8x256xf32> to vector<8x256xf32>
    %cst = arith.constant dense<0.000000e+00> : vector<8xf32>
    %2 = vector.multi_reduction <add>, %1, %cst [1] : vector<8x256xf32> to vector<8xf32>
    %3 = vector.shape_cast %2 : vector<8xf32> to vector<8x1xf32>
    %cst_2 = arith.constant 3.906250e-03 : f32
    %4 = vector.broadcast %cst_2 : f32 to vector<8x1xf32>
    %5 = arith.mulf %3, %4 : vector<8x1xf32>
    %6 = tpu.iota {dimensions = array<i32: 0>} : vector<8x1xi32>
    %cst_3 = arith.constant 0.000000e+00 : f32
    %7 = vector.broadcast %cst_3 : f32 to vector<8x1xf32>
    %c1_i32 = arith.constant 1 : i32
    %8 = tpu.dynamic_rotate %5 by %c1_i32 dim 0 : vector<8x1xf32>, i32 -> vector<8x1xf32>
    %c-1_i32 = arith.constant -1 : i32
    %9 = vector.broadcast %c-1_i32 : i32 to vector<8x1xi32>
    %10 = arith.addi %6, %9 : vector<8x1xi32>
    %c0_i32 = arith.constant 0 : i32
    %11 = vector.broadcast %c0_i32 : i32 to vector<8x1xi32>
    %12 = arith.cmpi sge, %10, %11 : vector<8x1xi32>
    %c-1_i32_4 = arith.constant -1 : i32
    %13 = vector.broadcast %c-1_i32_4 : i32 to vector<8x1xi32>
    %14 = arith.addi %6, %13 : vector<8x1xi32>
    %c8_i32 = arith.constant 8 : i32
    %15 = vector.broadcast %c8_i32 : i32 to vector<8x1xi32>
    %16 = arith.cmpi slt, %14, %15 : vector<8x1xi32>
    %17 = arith.andi %12, %16 : vector<8x1xi1>
    %c0_5 = arith.constant 0 : index
    %18 = memref.load %arg1[%c0_5] : memref<3xf32, #tpu.memory_space<smem>>
    %cst_6 = arith.constant 0.000000e+00 : f32
    %19 = vector.broadcast %cst_6 : f32 to vector<8x1xf32>
    %20 = arith.select %17, %8, %19 : vector<8x1xi1>, vector<8x1xf32>
    %21 = vector.broadcast %18 : f32 to vector<8x1xf32>
    %22 = arith.mulf %21, %20 : vector<8x1xf32>
    %23 = arith.addf %7, %22 : vector<8x1xf32>
    %c0_i32_7 = arith.constant 0 : i32
    %24 = vector.broadcast %c0_i32_7 : i32 to vector<8x1xi32>
    %25 = arith.addi %6, %24 : vector<8x1xi32>
    %c0_i32_8 = arith.constant 0 : i32
    %26 = vector.broadcast %c0_i32_8 : i32 to vector<8x1xi32>
    %27 = arith.cmpi sge, %25, %26 : vector<8x1xi32>
    %c0_i32_9 = arith.constant 0 : i32
    %28 = vector.broadcast %c0_i32_9 : i32 to vector<8x1xi32>
    %29 = arith.addi %6, %28 : vector<8x1xi32>
    %c8_i32_10 = arith.constant 8 : i32
    %30 = vector.broadcast %c8_i32_10 : i32 to vector<8x1xi32>
    %31 = arith.cmpi slt, %29, %30 : vector<8x1xi32>
    %32 = arith.andi %27, %31 : vector<8x1xi1>
    %c1 = arith.constant 1 : index
    %33 = memref.load %arg1[%c1] : memref<3xf32, #tpu.memory_space<smem>>
    %cst_11 = arith.constant 0.000000e+00 : f32
    %34 = vector.broadcast %cst_11 : f32 to vector<8x1xf32>
    %35 = arith.select %32, %5, %34 : vector<8x1xi1>, vector<8x1xf32>
    %36 = vector.broadcast %33 : f32 to vector<8x1xf32>
    %37 = arith.mulf %36, %35 : vector<8x1xf32>
    %38 = arith.addf %23, %37 : vector<8x1xf32>
    %c7_i32 = arith.constant 7 : i32
    %39 = tpu.dynamic_rotate %5 by %c7_i32 dim 0 : vector<8x1xf32>, i32 -> vector<8x1xf32>
    %c1_i32_12 = arith.constant 1 : i32
    %40 = vector.broadcast %c1_i32_12 : i32 to vector<8x1xi32>
    %41 = arith.addi %6, %40 : vector<8x1xi32>
    %c0_i32_13 = arith.constant 0 : i32
    %42 = vector.broadcast %c0_i32_13 : i32 to vector<8x1xi32>
    %43 = arith.cmpi sge, %41, %42 : vector<8x1xi32>
    %c1_i32_14 = arith.constant 1 : i32
    %44 = vector.broadcast %c1_i32_14 : i32 to vector<8x1xi32>
    %45 = arith.addi %6, %44 : vector<8x1xi32>
    %c8_i32_15 = arith.constant 8 : i32
    %46 = vector.broadcast %c8_i32_15 : i32 to vector<8x1xi32>
    %47 = arith.cmpi slt, %45, %46 : vector<8x1xi32>
    %48 = arith.andi %43, %47 : vector<8x1xi1>
    %c2 = arith.constant 2 : index
    %49 = memref.load %arg1[%c2] : memref<3xf32, #tpu.memory_space<smem>>
    %cst_16 = arith.constant 0.000000e+00 : f32
    %50 = vector.broadcast %cst_16 : f32 to vector<8x1xf32>
    %51 = arith.select %48, %39, %50 : vector<8x1xi1>, vector<8x1xf32>
    %52 = vector.broadcast %49 : f32 to vector<8x1xf32>
    %53 = arith.mulf %52, %51 : vector<8x1xf32>
    %54 = arith.addf %38, %53 : vector<8x1xf32>
    %55 = arith.negf %54 : vector<8x1xf32>
    %56 = math.exp %55 : vector<8x1xf32>
    %cst_17 = arith.constant 1.000000e+00 : f32
    %57 = vector.broadcast %cst_17 : f32 to vector<8x1xf32>
    %58 = arith.addf %57, %56 : vector<8x1xf32>
    %59 = arith.divf %57, %58 : vector<8x1xf32>
    %60 = vector.broadcast %59 : vector<8x1xf32> to vector<8x256xf32>
    %61 = arith.mulf %1, %60 : vector<8x256xf32>
    %c0_18 = arith.constant 0 : index
    %c0_19 = arith.constant 0 : index
    %c0_20 = arith.constant 0 : index
    %62 = vector.load %arg3[%c0_18, %c0_19, %c0_20] : memref<1x8x256xf32, #tpu.memory_space<vmem>>, vector<1x8x256xf32>
    %63 = vector.shape_cast %62 : vector<1x8x256xf32> to vector<8x256xf32>
    %64 = vector.shape_cast %61 : vector<8x256xf32> to vector<1x8x256xf32>
    tpu.vector_store %arg3[%c0_18, %c0_19, %c0_20], %64 {strides = array<i32>} : memref<1x8x256xf32, #tpu.memory_space<vmem>>, vector<1x8x256xf32>,
    return
  }
  func.func @transform_0(%arg0: i32, %arg1: memref<3xf32, #tpu.memory_space<smem>>) -> (i32, i32, i32) {
    %c0_i32 = arith.constant 0 : i32
    %c0_i32_0 = arith.constant 0 : i32
    %c0_i32_1 = arith.constant 0 : i32
    return %arg0, %c0_i32, %c0_i32_0 : i32, i32, i32
  }
  func.func @transform_1(%arg0: i32, %arg1: memref<3xf32, #tpu.memory_space<smem>>) -> (i32, i32, i32) {
    %c0_i32 = arith.constant 0 : i32
    %c0_i32_0 = arith.constant 0 : i32
    %c0_i32_1 = arith.constant 0 : i32
    return %arg0, %c0_i32, %c0_i32_0 : i32, i32, i32
  }
}

</mosaic_0001>

<bundles_post_ra>
// kernel: tpu_custom_call.1
= control target key start
LH: loop header
LB: loop body
LE: loop exit
PB: predicated region body
PF: predicated region fallthrough
CT: control target
= control target key end

     0   :  { %s652_s0 = inlined_call_operand.hbm [shape: f32[3], index: 0, kind: input, shape index: {}]   ;;  %s653_s1 = inlined_call_operand.hbm [shape: f32[2,8,256], index: 1, kind: input, shape index: {}]   ;;  %s654_s2 = inlined_call_operand.hbm [shape: f32[2,8,256], index: 2, kind: output, shape index: {}]  }
   0x1   :  { %s346_s11 = scalar_lea.hbm %s652_s0, 16 }
   0x2   :  { %p347_p0 = scmp.ne.s32.totalorder %s652_s0, %s346_s11  ;;  %p350_p1 = scmp.lt.u32.totalorder %s346_s11, %s652_s0 }
   0x4   :  { %p352_p2 = pnand %p350_p1, %p347_p0 }
   0x6   :  { %355 = shalt.err (!%p352_p2)  }
   0x7   :  { %s456_s16 = smov [#allocation3]  }
   0x8   :  { %8 = dma.hbm_to_smem %s652_s0, 16, %s456_s16, [#allocation2] }
   0x9   :  { %430 = dma.done.wait [#allocation2], 16 }
   0xa   :  { %431 = vsyncadd [#allocation2], 4294967280 }
   0xb   :  { %10 = sfence }
   0xc   :  { %11 = vsyncpa [#allocation5], 0 }
   0xd   :  { %13 = vsyncpa [#allocation5 + $0x1], 0 }
   0xe   :  { %14 = vsyncpa [#allocation6], 0 }
   0xf   :  { %16 = vsyncpa [#allocation6 + $0x1], 0  ;;  %s487_s19 = smov 0   ;;  %s489_s20 = smov 0  }
  0x10   :  { %s491_s21 = smov 0   ;;  %s493_s22 = smov 0  }
  0x11 LB: > { %s508_s0 = sadd.s32 4294967295, %s454_s22   ;;  %s274_s23 = sadd.s32 4294967294, %s454_s22   ;;  %s454_s22 = sphi %s493_s22, %s669_s22   ;;  %s450_s21 = sphi %s491_s21, %s668_s21   ;;  %s446_s20 = sphi %s489_s20, %s667_s20   ;;  %s442_s19 = sphi %s487_s19, %s666_s19  }
  0x12   : > { %s512_s24 = sadd.s32 1, %s454_s22   ;;  %s29_s25 = sadd.s32 1, %s450_s21 }
  0x13   : > { %s26_s26 = ssub.s32 %s454_s22, %s512_s24  ;;  %p36_p3 = scmp.ne.s32.totalorder %s450_s21, %s446_s20 }
  0x14   : > { %p27_p4 = scmp.eq.s32.totalorder %s26_s26, 0  ;;  %p37_p5 = scmp.eq.s32.totalorder %s454_s22, 0 }
  0x15   : > { %p42_p6 = scmp.ne.s32.totalorder %s446_s20, %s442_s19  ;;  %p43_p7 = scmp.eq.s32.totalorder %s508_s0, 0 }
  0x16   : > { %s524_s27 = scalar_select %p27_p4, %s450_s21, %s29_s25  }
  0x17   : > { %p526_p8 = por %p37_p5, %p36_p3  ;;  %p530_p9 = por %p43_p7, %p42_p6 }
  0x18   : > { %p66_p10 = scmp.eq.s32.totalorder %s508_s0, 1  ;;  %p72_p11 = scmp.eq.s32.totalorder %s274_s23, 1 }
  0x19   : > { %p305_p13 = scmp.lt.s32.totalorder %s454_s22, 2  ;;  %s92_s4 = sand.u32 1, %s450_s21  }
  0x1a   : > { %p537_p0 = por %p66_p10, %p36_p3  ;;  %p541_p1 = por %p72_p11, %p42_p6 }
  0x1b   : > { %s291_s5 = sshll.u32 %s454_s22, 8  ;;  %s277_s6 = sshll.u32 %s92_s4, 4 }
  0x1c   : > { %s658_s30 = scalar_select %p537_p0, 1, 0 }
  0x1d   : > { %s659_s3 = scalar_select %p541_p1, 1, 0 }
  0x1e   : > { %s550_s9 = scalar_lea.hbm %s653_s1, %s291_s5  ;;  %s96_s10 = scalar_lea.vmem [#allocation4], %s277_s6 }
  0x1f   : > { %s104_s11 = sshll.u32 %s96_s10, 4  ;;  %p554_p2 = pnand %p305_p13, %p526_p8  ;;  %s558_s11 = int_to_ptr.vmem [resolvable:$true] %s104_s11 }
  0x20   : > { %s93_s13 = scalar_lea.sflag [#allocation5], %s92_s4  ;;  %s356_s14 = scalar_lea.hbm %s550_s9, 256 }
  0x21   : > { %p357_p5 = scmp.ne.s32.totalorder %s550_s9, %s356_s14  ;;  %p358_p6 = pneg %p554_p2 }
  0x22   : > { %s361_s17 = scalar_lea.hbm %s653_s1, 512  ;;  %p362_p8 = scmp.lt.u32.totalorder %s550_s9, %s653_s1 }
  0x23   : > { %p359_p7 = pnand %p358_p6, %p357_p5  ;;  %p363_p11 = scmp.lt.u32.totalorder %s361_s17, %s356_s14 }
  0x24   : > { %p365_p12 = scmp.lt.u32.totalorder %s356_s14, %s550_s9 }
  0x25   : > { %p360_p10 = pneg %p359_p7  ;;  %p364_p13 = por %p363_p11, %p362_p8 }
  0x27   : > { %p366_p3 = por %p365_p12, %p364_p13 }
  0x29   : > { %p367_p4 = pnand %p366_p3, %p360_p10 }
  0x2b   : > { %370 = shalt.err (!%p367_p4)
}
  0x2c   : > { %s371_s25 = scalar_lea.vmem %s558_s11, 256  ;;  %s457_s26 = smov [#allocation4]  }
  0x2d   : > { %p372_p5 = scmp.ne.s32.totalorder %s558_s11, %s371_s25  ;;  %s376_s28 = sshll.u32 %s457_s26, 4  ;;  %s377_s28 = int_to_ptr.vmem [resolvable:$false] %s376_s28 }
  0x2e   : > { %s378_s4 = scalar_lea.vmem %s377_s28, 512  ;;  %p379_p0 = scmp.lt.s32.totalorder %s558_s11, %s377_s28 }
  0x2f   : > { %p374_p7 = pnand %p372_p5, %p358_p6  ;;  %p380_p8 = scmp.lt.s32.totalorder %s378_s4, %s371_s25 }
  0x31   : > { %p375_p1 = pneg %p374_p7  ;;  %p381_p11 = por %p380_p8, %p379_p0 }
  0x33   : > { %p382_p12 = pnand %p381_p11, %p375_p1 }
  0x35   : > { %385 = shalt.err (!%p382_p12)
}
  0x36   : > { %300 = dma.hbm_to_vmem [thread:$0]  (!%p554_p2), %s550_s9, 256, %s558_s11, %s93_s13  }
  0x37   : > { %p661_p3 = scmp.lt.s32.totalorder %s454_s22, 3  ;;  %p662_p4 = scmp.ge.s32.totalorder %s454_s22, 1 }
  0x39   : > { %p110_p6 = pnand %p662_p4, %p661_p3 }
  0x3a   : > { %s592_s5 = sand.u32 (!%p110_p6), 1, %s446_s20  }
  0x3b   : > { %113 = sbr.rel (%p110_p6) target bundleno = 393 (0x189), region = 24  ;;  %s281_s6 = sshll.u32 (!%p110_p6), %s592_s5, 4 }
  0x3c   : > { %s116_s7 = scalar_lea.sflag (!%p110_p6), [#allocation5], %s592_s5  ;;  %s119_s8 = scalar_lea.vmem (!%p110_p6), [#allocation4], %s281_s6 }
  0x42   : > { %433 = dma.done.wait (%p530_p9), %s116_s7, 256  }
  0x43   : > { %435 = vsyncadd (%p530_p9), %s116_s7, 4294967040  ;;  %v138_v0 = vld [vmem:[%s119_s8] sm:$0xff]  ;;  %v139_v1 = vld [vmem:[%s119_s8 + $0x8] sm:$0xff]  ;;  %v458_v3 = vmov 0   ;;  %v144_v4 = vlaneseq  ;;  %s151_s9 = sld [smem:[#allocation3]]  ;;  %s283_s10 = sld [smem:[#allocation3 + $0x1]] }
  0x44   : > { %v140_v2 = vadd.f32 %v139_v1, %v138_v0  ;;  %341 = vset.pattern.permute.xlu0 %v458_v3  ;;  %s284_s11 = sld [smem:[#allocation3 + $0x2]]  ;;  %s292_s29 = sshll.u32 %s508_s0, 8 }
  0x45   : > { %v145_v5 = vshrl.u32 %v144_v4, 7  ;;  %s137_s12 = scalar_lea.vmem [#allocation7], %s281_s6  ;;  %s608_s16 = scalar_lea.hbm %s654_s2, %s292_s29 }
  0x46   : > { %141 = vadd.xlane.f32.xlu0 %v140_v2  ;;  %s204_s13 = sshll.u32 %s137_s12, 4  ;;  %s190_s17 = scalar_lea.sflag [#allocation6], %s592_s5  ;;  %s610_s13 = int_to_ptr.vmem [resolvable:$true] %s204_s13 }
  0x47   : > { %v147_v6 = vadd.s32 4294967295, %v145_v5  ;;  %v165_v7 = vadd.s32 1, %v145_v5  ;;  %s386_s0 = scalar_lea.vmem %s610_s13, 256  ;;  %p663_p0 = scmp.ne.s32.totalorder %s658_s30, 0 }
  0x48   : > { %p387_p9 = scmp.ne.s32.totalorder %s610_s13, %s386_s0  ;;  %s459_s18 = smov [#allocation7]  }
  0x49   : > { %vm148_vm0 = vcmp.ge.s32.totalorder %v147_v6, 0  ;;  %vm167_vm1 = vcmp.lt.s32.totalorder %v165_v7, 8  ;;  %v153_v10 = vstv %s151_s9  ;;  %v161_v11 = vstv %s283_s10  ;;  %s390_s23 = sshll.u32 %s459_s18, 4  ;;  %s391_s23 = int_to_ptr.vmem [resolvable:$false] %s390_s23 }
  0x4a   : > { %v171_v14 = vstv %s284_s11  ;;  %p388_p1 = pnand %p387_p9, %p663_p0  ;;  %s392_s25 = scalar_lea.vmem %s391_s23, 512 }
  0x4b   : > { %p393_p10 = scmp.lt.s32.totalorder %s610_s13, %s391_s23  ;;  %p394_p13 = scmp.lt.s32.totalorder %s392_s25, %s386_s0 }
  0x4c   : > { %p389_p2 = pneg %p388_p1 }
  0x4d   : > { %p395_p5 = por %p394_p13, %p393_p10 }
  0x4f   : > { %p396_p7 = pnand %p395_p5, %p389_p2 }
  0xd3   : > { %v142_v8 = vpop.xlane.xlu0 %141 }
  0xd4   : > { %v143_v9 = vmul.f32 0.00390625, %v142_v8 }
  0xd6   : > { %v146_v12 = vrot.slane %v143_v9, 7  ;;  %v164_v13 = vrot.slane %v143_v9, 1  ;;  %v162_v18 = vmul.f32 %v161_v11, %v143_v9 }
  0xd8   : > { %v152_v15 = vsel %vm148_vm0, %v146_v12, 0.0  ;;  %v170_v16 = vsel %vm167_vm1, %v164_v13, 0.0 }
  0xd9   : > { %v154_v17 = vmul.f32 %v153_v10, %v152_v15  ;;  %v172_v20 = vmul.f32 %v171_v14, %v170_v16 }
  0xdb   : > { %v163_v19 = vadd.f32 %v162_v18, %v154_v17 }
  0xdd   : > { %v173_v21 = vadd.f32 %v172_v20, %v163_v19 }
  0xdf   : > { %v285_v22 = vmul.f32 -1.442695, %v173_v21 }
  0xe1   : > { %342 = vpow2.f32 %v285_v22 }
  0xeb   : > { %v343_v23 = vpop.eup %342 }
  0xec   : > { %v177_v24 = vadd.f32 1.0, %v343_v23 }
  0xee   : > { %344 = vrcp.f32 %v177_v24 }
  0xf8   : > { %v345_v25 = vpop.eup %344 }
  0xf9   : > { %182 = vperm.xlu0 %341, %v345_v25  }
 0x178   : > { %v183_v26 = vpop.permute.xlu0 %182 }
 0x179   : > { %v185_v27 = vmul.f32 %v183_v26, %v138_v0  ;;  %v186_v28 = vmul.f32 %v183_v26, %v139_v1 }
 0x17b   : > { %187 = vst [vmem:[%s137_s12] sm:$0xff] %v185_v27  ;;  %188 = vst [vmem:[%s137_s12 + $0x8] sm:$0xff] %v186_v28 }
 0x17c   : > { %399 = shalt.err (!%p396_p7)
}
 0x17d   : > { %s400_s26 = scalar_lea.hbm %s608_s16, 256  ;;  %s404_s5 = scalar_lea.hbm %s654_s2, 512 }
 0x17e   : > { %p401_p8 = scmp.ne.s32.totalorder %s608_s16, %s400_s26  ;;  %p405_p3 = scmp.lt.u32.totalorder %s608_s16, %s654_s2 }
 0x17f   : > { %p406_p4 = scmp.lt.u32.totalorder %s404_s5, %s400_s26  ;;  %p408_p9 = scmp.lt.u32.totalorder %s400_s26, %s608_s16 }
 0x180   : > { %p402_p11 = pnand %p401_p8, %p663_p0 }
 0x181   : > { %p407_p6 = por %p406_p4, %p405_p3 }
 0x182   : > { %p403_p12 = pneg %p402_p11 }
 0x183   : > { %p409_p1 = por %p408_p9, %p407_p6 }
 0x185   : > { %p410_p2 = pnand %p409_p1, %p403_p12 }
 0x187   : > { %413 = shalt.err (!%p410_p2)
}
 0x188   : > { %295 = dma.vmem_to_hbm [thread:$0]  (%p663_p0), %s610_s13, 256, %s608_s16, %s190_s17  }
 0x189 PF: > { %s216_s8 = sand.u32 1, %s442_s19   ;;  %p664_p10 = scmp.ne.s32.totalorder %s659_s3, 0 }
 0x18a   : > { %p665_p13 = scmp.ge.s32.totalorder %s454_s22, 2  ;;  %s217_s9 = scalar_lea.sflag [#allocation6], %s216_s8 }
 0x18c   : > { %p302_p5 = pnand %p665_p13, %p664_p10 }
 0x18e   : > { %437 = dma.done.wait (!%p302_p5), %s217_s9, 256  }
 0x18f   : > { %439 = vsyncadd (!%p302_p5), %s217_s9, 4294967040  ;;  %p19_p7 = scmp.ge.s32.totalorder %s512_s24, 4   ;;  %s666_s19 = smov %s446_s20 }
 0x190   : > { %s667_s20 = smov %s450_s21  ;;  %s668_s21 = smov %s524_s27 }
 0x191   : > { %s669_s22 = smov %s512_s24  ;;  %21 = sbr.rel (!%p19_p7) target bundleno = 17 (0x11), region = 69 }
 0x198   :  { %222 = vsyncpa [#allocation5], 1 }
 0x199   :  { %224 = vsyncpa [#allocation5 + $0x1], 1 }
 0x19a   :  { %225 = vsyncpa [#allocation6], 1 }
 0x19b   :  { %227 = vsyncpa [#allocation6 + $0x1], 1 }

</bundles_post_ra>
